<compile_context>
chip_gen: v7x
topology: tpu7x:2x2x1
jax: 0.10.0
libtpu: 0.0.40
codegen_flags: <defaults>
</compile_context>

<pallas_src>
import functools

import jax
import jax.numpy as jnp
from jax import lax
from jax.experimental import pallas as pl
from jax.experimental.pallas import tpu as pltpu

EMB_DIM = 2
TOKENS_PER_NODE = 40
HIDDEN = 80            # TOKENS_PER_NODE * EMB_DIM, matches .view(-1, 80)
HIDDEN_PAD = 128       # lane-dense padded feature dim
OUT_DIM = 20
OUT_PAD = 128          # lane-dense padded output dim
NUM_EMB = 10000
BN_EPS = 1e-5
NEG_INF = -1e30


def _round_up(x, m):
    return ((x + m - 1) // m) * m


# --------------------------------------------------------------------------
# Kernel 1: XW = H @ W  (row-tiled feature transform, bf16 in, bf16 out)
# --------------------------------------------------------------------------
def _xw_kernel(h_ref, w_ref, xw_ref):
    xw_ref[...] = jnp.dot(h_ref[...], w_ref[...],
                          preferred_element_type=jnp.float32).astype(xw_ref.dtype)


def _feature_matmul(h, w, tm):
    n_pad, f = h.shape
    return pl.pallas_call(
        _xw_kernel,
        out_shape=jax.ShapeDtypeStruct((n_pad, f), jnp.bfloat16),
        grid_spec=pltpu.PrefetchScalarGridSpec(
            num_scalar_prefetch=0,
            grid=(n_pad // tm,),
            in_specs=[pl.BlockSpec((tm, f), lambda i: (i, 0)),
                      pl.BlockSpec((f, f), lambda i: (0, 0))],
            out_specs=pl.BlockSpec((tm, f), lambda i: (i, 0))),
        compiler_params=pltpu.CompilerParams(
            dimension_semantics=("parallel",)),
    )(h, w)


# --------------------------------------------------------------------------
# Kernel 2: AGG = A_hat @ XW  (tiled grid: i = row tiles, k = reduction tiles)
# --------------------------------------------------------------------------
def _aggregate_kernel(a_ref, xw_ref, o_ref, acc_ref):
    k = pl.program_id(1)

    @pl.when(k == 0)
    def _():
        acc_ref[...] = jnp.zeros_like(acc_ref)

    acc_ref[...] += jnp.dot(a_ref[...], xw_ref[...],
                            preferred_element_type=jnp.float32)

    @pl.when(k == pl.num_programs(1) - 1)
    def _():
        o_ref[...] = acc_ref[...]


def _aggregate(a_hat, xw, tm, tk):
    n_pad, f = xw.shape
    return pl.pallas_call(
        _aggregate_kernel,
        out_shape=jax.ShapeDtypeStruct((n_pad, f), jnp.float32),
        grid_spec=pltpu.PrefetchScalarGridSpec(
            num_scalar_prefetch=0,
            grid=(n_pad // tm, n_pad // tk),
            in_specs=[pl.BlockSpec((tm, tk), lambda i, k: (i, k)),
                      pl.BlockSpec((tk, f), lambda i, k: (k, 0))],
            out_specs=pl.BlockSpec((tm, f), lambda i, k: (i, 0)),
            scratch_shapes=[pltpu.VMEM((tm, f), jnp.float32)]),
        compiler_params=pltpu.CompilerParams(
            dimension_semantics=("parallel", "arbitrary")),
    )(a_hat, xw)


# --------------------------------------------------------------------------
# Kernel 3: BatchNorm (train-mode, single-pass sum/sumsq) + ReLU + row mask
# --------------------------------------------------------------------------
def _bn_relu_kernel(agg_ref, g_ref, b_ref, rmask_ref, o_ref, *, inv_n):
    agg = agg_ref[...]                                   # [Np, 128] f32
    s = jnp.sum(agg, axis=0, keepdims=True)              # single pass ...
    sq = jnp.sum(agg * agg, axis=0, keepdims=True)       # ... sum & sumsq
    mean = s * inv_n
    var = jnp.maximum(sq * inv_n - mean * mean, 0.0)     # biased variance
    norm = (agg - mean) * lax.rsqrt(var + BN_EPS)
    h = jnp.maximum(norm * g_ref[...] + b_ref[...], 0.0)  # scale/shift + ReLU
    # Zero padded rows so they never contaminate later stats / aggregation.
    o_ref[...] = (h * rmask_ref[...]).astype(o_ref.dtype)


def _bn_relu(agg, gamma, beta, rowmask, inv_n):
    n_pad, f = agg.shape
    vmem = pl.BlockSpec(memory_space=pltpu.MemorySpace.VMEM)
    # TODO(synk): if N grows beyond ~64K nodes, tile this into a stats pass +
    # normalize pass instead of keeping [Np,128] fully resident.
    return pl.pallas_call(
        functools.partial(_bn_relu_kernel, inv_n=inv_n),
        out_shape=jax.ShapeDtypeStruct((n_pad, f), jnp.bfloat16),
        in_specs=[vmem] * 4,
        out_specs=vmem,
    )(agg, gamma, beta, rowmask)


# --------------------------------------------------------------------------
# Kernel 4: global_max_pool (vectorized masked max) + Linear(80->20, padded)
# --------------------------------------------------------------------------
def _pool_linear_kernel(h_ref, mask_ref, wl_ref, bl_ref, o_ref):
    h = h_ref[...].astype(jnp.float32)                   # [Np, 128]
    mask = mask_ref[...]                                 # [G, Np]
    pooled = jnp.max(jnp.where(mask[:, :, None] > 0.0, h[None, :, :],
                               jnp.float32(NEG_INF)), axis=1)   # [G, 128]
    o_ref[...] = (jnp.dot(pooled, wl_ref[...],
                          preferred_element_type=jnp.float32) + bl_ref[...])


# --------------------------------------------------------------------------
# JAX glue
# --------------------------------------------------------------------------
def build_gcn_adj(edge_index, num_nodes, padded_nodes):
    """Dense D^-1/2 (A + I) D^-1/2 (PyG gcn_norm, add_self_loops), bf16, padded."""
    loops = jnp.arange(num_nodes, dtype=edge_index.dtype)
    ei = jnp.concatenate([edge_index, jnp.stack([loops, loops])], axis=1)
    row, col = ei[0], ei[1]                              # src, dst
    deg = jnp.zeros((padded_nodes,), jnp.float32).at[col].add(1.0)
    dinv = jnp.where(deg > 0, lax.rsqrt(deg), 0.0)
    norm = dinv[row] * dinv[col]
    a = jnp.zeros((padded_nodes, padded_nodes), jnp.float32).at[col, row].add(norm)
    return a.astype(jnp.bfloat16)


def init_params(key):
    ks = jax.random.split(key, 6)

    def glorot(k, shape):
        lim = jnp.sqrt(6.0 / (shape[0] + shape[1]))
        return jax.random.uniform(k, shape, jnp.float32, -lim, lim)

    lim_lin = 1.0 / jnp.sqrt(float(HIDDEN))
    # NOTE: GCNConv bias (b1/b2) is omitted — a per-feature constant is exactly
    # cancelled by the train-mode BatchNorm mean subtraction, so outputs are
    # identical without it.
    return dict(
        emb=jax.random.normal(ks[0], (NUM_EMB, EMB_DIM), jnp.float32),
        w1=glorot(ks[1], (HIDDEN, HIDDEN)),
        g1=jnp.ones((1, HIDDEN), jnp.float32), bt1=jnp.zeros((1, HIDDEN), jnp.float32),
        w2=glorot(ks[2], (HIDDEN, HIDDEN)),
        g2=jnp.ones((1, HIDDEN), jnp.float32), bt2=jnp.zeros((1, HIDDEN), jnp.float32),
        wl=glorot(ks[3], (HIDDEN, OUT_DIM)),
        bl=jax.random.uniform(ks[4], (1, OUT_DIM), jnp.float32, -lim_lin, lim_lin),
    )


def g2dist_forward(x_tokens, edge_index, batch, params, num_graphs):
    n = x_tokens.shape[0]
    n_pad = max(HIDDEN_PAD, _round_up(n, HIDDEN_PAD))     # multiple of 128

    # Tile sizes for the A_hat aggregation: 128-aligned, working set stays well
    # under the 16 MiB v5e default scoped VMEM (and trivially under v6e/v7x).
    tm = 256 if n_pad % 256 == 0 else 128
    tk = 512 if n_pad % 512 == 0 else (256 if n_pad % 256 == 0 else 128)

    # ---- glue: embedding gather, dense normalized adjacency, masks, padding --
    x_emb = params["emb"][x_tokens].reshape(n, HIDDEN)
    h = (jnp.zeros((n_pad, HIDDEN_PAD), jnp.float32)
         .at[:n, :HIDDEN].set(x_emb).astype(jnp.bfloat16))

    a_hat = build_gcn_adj(edge_index, n, n_pad)           # bf16 [Np, Np]

    rowmask = jnp.zeros((n_pad, 1), jnp.float32).at[:n, :].set(1.0)
    gmask = jnp.zeros((num_graphs, n_pad), jnp.float32).at[:, :n].set(
        (batch[None, :] == jnp.arange(num_graphs, dtype=batch.dtype)[:, None])
        .astype(jnp.float32))

    def pad_mat(w, r, c):
        return jnp.zeros((r, c), jnp.float32).at[:w.shape[0], :w.shape[1]].set(w)

    def pad_row(v, c):
        return jnp.zeros((1, c), jnp.float32).at[:, :v.shape[1]].set(v)

    w1 = pad_mat(params["w1"], HIDDEN_PAD, HIDDEN_PAD).astype(jnp.bfloat16)
    w2 = pad_mat(params["w2"], HIDDEN_PAD, HIDDEN_PAD).astype(jnp.bfloat16)
    g1, bt1 = pad_row(params["g1"], HIDDEN_PAD), pad_row(params["bt1"], HIDDEN_PAD)
    g2, bt2 = pad_row(params["g2"], HIDDEN_PAD), pad_row(params["bt2"], HIDDEN_PAD)
    wl = pad_mat(params["wl"], HIDDEN_PAD, OUT_PAD)
    bl = pad_row(params["bl"], OUT_PAD)

    inv_n = 1.0 / float(n)

    # ---- 2x { GCNConv -> BatchNorm -> ReLU } -------------------------------
    for w, g, bt in ((w1, g1, bt1), (w2, g2, bt2)):
        xw = _feature_matmul(h, w, tm)                    # [Np, 128] bf16
        agg = _aggregate(a_hat, xw, tm, tk)               # [Np, 128] f32
        h = _bn_relu(agg, g, bt, rowmask, inv_n)          # [Np, 128] bf16

    # ---- global_max_pool + Linear ------------------------------------------
    vmem = pl.BlockSpec(memory_space=pltpu.MemorySpace.VMEM)
    out = pl.pallas_call(
        _pool_linear_kernel,
        out_shape=jax.ShapeDtypeStruct((num_graphs, OUT_PAD), jnp.float32),
        in_specs=[vmem] * 4,
        out_specs=vmem,
    )(h, gmask, wl, bl)
    return out[:, :OUT_DIM]


if __name__ == "__main__":
    key = jax.random.PRNGKey(0)
    k_tok, k_src, k_dst, k_par = jax.random.split(key, 4)

    NUM_NODES = 24
    NUM_GRAPHS = 2
    NODES_PER_GRAPH = NUM_NODES // NUM_GRAPHS
    NUM_EDGES = 40

    # Node token features: [N, 40] ints in [0, 10000) -> embedded to [N, 80].
    x_tokens = jax.random.randint(k_tok, (NUM_NODES, TOKENS_PER_NODE),
                                  0, NUM_EMB, dtype=jnp.int32)

    # Random edges, kept within each graph.
    src = jax.random.randint(k_src, (NUM_EDGES,), 0, NODES_PER_GRAPH, dtype=jnp.int32)
    dst = jax.random.randint(k_dst, (NUM_EDGES,), 0, NODES_PER_GRAPH, dtype=jnp.int32)
    offs = jnp.repeat(jnp.arange(NUM_GRAPHS, dtype=jnp.int32) * NODES_PER_GRAPH,
                      NUM_EDGES // NUM_GRAPHS)
    edge_index = jnp.stack([src + offs, dst + offs])          # [2, E]

    batch = jnp.repeat(jnp.arange(NUM_GRAPHS, dtype=jnp.int32), NODES_PER_GRAPH)  # [N]

    params = init_params(k_par)

    out = g2dist_forward(x_tokens, edge_index, batch, params, NUM_GRAPHS)
    out = jax.block_until_ready(out)
    assert out.shape == (NUM_GRAPHS, OUT_DIM)
    print("KERNEL_OK")
</pallas_src>

<mosaic_0001>
module attributes {stable_mosaic.version = 11 : i64} {
  func.func @_xw_kernel(%arg0: i32, %arg1: memref<128x128xbf16, #tpu.memory_space<vmem>>, %arg2: memref<128x128xbf16, #tpu.memory_space<vmem>>, %arg3: memref<128x128xbf16, #tpu.memory_space<vmem>>) attributes {dimension_semantics = [#tpu.dimension_semantics<parallel>], iteration_bounds = array<i64: 1>, scalar_prefetch = 0 : i64, scratch_operands = 0 : i64, tpu.core_type = #tpu.core_type<tc>, window_params = [{transform_indices = @transform_0, window_bounds = array<i64: 128, 128>}, {pipeline_mode = #tpu.pipeline_mode<synchronous>, transform_indices = @transform_1, window_bounds = array<i64: 128, 128>}, {transform_indices = @transform_2, window_bounds = array<i64: 128, 128>}]} {
    %c0 = arith.constant 0 : index
    %c0_0 = arith.constant 0 : index
    %0 = vector.load %arg1[%c0, %c0_0] : memref<128x128xbf16, #tpu.memory_space<vmem>>, vector<128x128xbf16>
    %c0_1 = arith.constant 0 : index
    %c0_2 = arith.constant 0 : index
    %1 = vector.load %arg2[%c0_1, %c0_2] : memref<128x128xbf16, #tpu.memory_space<vmem>>, vector<128x128xbf16>
    %cst = arith.constant dense<0.000000e+00> : vector<128x128xf32>
    %2 = tpu.matmul %0, %1, %cst {dimension_numbers = #tpu.dot_dimension_numbers<[1], [0], [0], [1], [0, 0, 1, 1], [], []>} : vector<128x128xbf16>, vector<128x128xbf16>, vector<128x128xf32> -> vector<128x128xf32>
    %3 = arith.truncf %2 : vector<128x128xf32> to vector<128x128xbf16>
    %c0_3 = arith.constant 0 : index
    %c0_4 = arith.constant 0 : index
    %4 = vector.load %arg3[%c0_3, %c0_4] : memref<128x128xbf16, #tpu.memory_space<vmem>>, vector<128x128xbf16>
    tpu.vector_store %arg3[%c0_3, %c0_4], %3 {strides = array<i32>} : memref<128x128xbf16, #tpu.memory_space<vmem>>, vector<128x128xbf16>,
    return
  }
  func.func @transform_0(%arg0: i32) -> (i32, i32) {
    %c0_i32 = arith.constant 0 : i32
    %c0_i32_0 = arith.constant 0 : i32
    return %arg0, %c0_i32 : i32, i32
  }
  func.func @transform_1(%arg0: i32) -> (i32, i32) {
    %c0_i32 = arith.constant 0 : i32
    %c0_i32_0 = arith.constant 0 : i32
    %c0_i32_1 = arith.constant 0 : i32
    return %c0_i32, %c0_i32_0 : i32, i32
  }
  func.func @transform_2(%arg0: i32) -> (i32, i32) {
    %c0_i32 = arith.constant 0 : i32
    %c0_i32_0 = arith.constant 0 : i32
    return %arg0, %c0_i32 : i32, i32
  }
}

</mosaic_0001>

<bundles_post_ra>
// kernel: tpu_custom_call.1
= control target key start
LH: loop header
LB: loop body
LE: loop exit
PB: predicated region body
PF: predicated region fallthrough
CT: control target
= control target key end

     0   :  { %7 = vsyncpa [#allocation3], 0  ;;  %s681_s0 = inlined_call_operand.hbm [shape: bf16[128,128], index: 0, kind: input, shape index: {}]   ;;  %s682_s1 = inlined_call_operand.hbm [shape: bf16[128,128], index: 1, kind: input, shape index: {}]   ;;  %s683_s2 = inlined_call_operand.hbm [shape: bf16[128,128], index: 2, kind: output, shape index: {}]  }
   0x1   :  { %8 = vsyncpa [#allocation6], 0 }
   0x2   :  { %9 = vsyncpa [#allocation4], 0  ;;  %s616_s9 = smov [#allocation2]   ;;  %s544_s13 = scalar_lea.hbm %s681_s0, 1024 }
   0x3   :  { %s15_s10 = sshll.u32 %s616_s9, 4  ;;  %p545_p0 = scmp.ne.s32.totalorder %s681_s0, %s544_s13  ;;  %s16_s10 = int_to_ptr.vmem [resolvable:$true] %s15_s10 }
   0x4   :  { %p548_p1 = scmp.lt.u32.totalorder %s544_s13, %s681_s0 }
   0x6   :  { %p550_p2 = pnand %p548_p1, %p545_p0 }
   0x8   :  { %553 = shalt.err (!%p550_p2)
}
   0x9   :  { %s554_s18 = scalar_lea.vmem %s16_s10, 1024  ;;  %p559_p4 = scmp.lt.s32.totalorder %s16_s10, %s16_s10 }
   0xa   :  { %p555_p3 = scmp.ne.s32.totalorder %s16_s10, %s554_s18  ;;  %p560_p5 = scmp.lt.s32.totalorder %s554_s18, %s554_s18 }
   0xc   :  { %p561_p6 = por %p560_p5, %p559_p4 }
   0xe   :  { %p562_p7 = pnand %p561_p6, %p555_p3 }
  0x10   :  { %565 = shalt.err (!%p562_p7)
}
  0x11   :  { %s617_s19 = smov 64   ;;  %s618_s20 = smov 4  }
  0x12   :  { %21 = dma.hbm_to_vmem [thread:$0]  %s681_s0, 1024, %s16_s10, [#allocation3], %s617_s19, %s617_s19, %s618_s20  }
  0x13   :  { %s619_s23 = smov [#allocation5]   ;;  %s566_s27 = scalar_lea.hbm %s682_s1, 1024 }
  0x14   :  { %s27_s24 = sshll.u32 %s619_s23, 4  ;;  %p567_p8 = scmp.ne.s32.totalorder %s682_s1, %s566_s27  ;;  %s28_s24 = int_to_ptr.vmem [resolvable:$true] %s27_s24 }
  0x15   :  { %p570_p9 = scmp.lt.u32.totalorder %s566_s27, %s682_s1 }
  0x17   :  { %p572_p10 = pnand %p570_p9, %p567_p8 }
  0x19   :  { %575 = shalt.err (!%p572_p10)
}
  0x1a   :  { %s576_s4 = scalar_lea.vmem %s28_s24, 1024  ;;  %p581_p12 = scmp.lt.s32.totalorder %s28_s24, %s28_s24 }
  0x1b   :  { %p577_p11 = scmp.ne.s32.totalorder %s28_s24, %s576_s4  ;;  %p582_p13 = scmp.lt.s32.totalorder %s576_s4, %s576_s4 }
  0x1d   :  { %p583_p0 = por %p582_p13, %p581_p12 }
  0x1f   :  { %p584_p1 = pnand %p583_p0, %p577_p11 }
  0x21   :  { %587 = shalt.err (!%p584_p1)
}
  0x22   :  { %33 = dma.hbm_to_vmem [thread:$0]  %s682_s1, 1024, %s28_s24, [#allocation6], %s617_s19, %s617_s19, %s618_s20  }
  0x23   :  { %610 = dma.done.wait [#allocation3], 1024  }
  0x24   :  { %611 = vsyncadd [#allocation3], 4294966272 }
  0x25   :  { %612 = dma.done.wait [#allocation6], 1024  }
  0x26   :  { %613 = vsyncadd [#allocation6], 4294966272  ;;  %v528_v0 = vld [vmem:[#allocation5] sm:$0xff]   ;;  %v529_v1 = vld [vmem:[#allocation5 + $0x8] sm:$0xff]   ;;  %s620_s1 = smov [#allocation7]  }
  0x27   :  { %475 = vmatprep.subr.bf16.mxu0 %v528_v0  ;;  %507 = vmatprep.subr.bf16.mxu1 %v528_v0  ;;  %v530_v2 = vld [vmem:[#allocation5 + $0x10] sm:$0xff]   ;;  %v531_v3 = vld [vmem:[#allocation5 + $0x18] sm:$0xff]   ;;  %v536_v4 = vld [vmem:[#allocation2] sm:$0xff]   ;;  %s351_s6 = sshll.u32 %s620_s1, 4  ;;  %s352_s6 = int_to_ptr.vmem [resolvable:$true] %s351_s6 }
  0x28   :  { %476 = vmatpush3.bf16.msra.mxu0 %v528_v0  ;;  %515 = vmatpush3.bf16.msra.mxu1 %v528_v0  ;;  %v537_v5 = vld [vmem:[#allocation2 + $0x20] sm:$0xff]   ;;  %v533_v7 = vld [vmem:[#allocation5 + $0x28] sm:$0xff]   ;;  %v534_v8 = vld [vmem:[#allocation5 + $0x30] sm:$0xff]   ;;  %s588_s7 = scalar_lea.vmem %s352_s6, 1024  ;;  %p593_p3 = scmp.lt.s32.totalorder %s352_s6, %s352_s6 }
  0x29   :  { %477 = vmatprep.subr.bf16.mxu0 %v529_v1  ;;  %508 = vmatprep.subr.bf16.mxu1 %v529_v1  ;;  %v532_v6 = vld [vmem:[#allocation5 + $0x20] sm:$0xff]   ;;  %v535_v9 = vld [vmem:[#allocation5 + $0x38] sm:$0xff]   ;;  %v538_v10 = vld [vmem:[#allocation2 + $0x8] sm:$0xff]   ;;  %p589_p2 = scmp.ne.s32.totalorder %s352_s6, %s588_s7  ;;  %p594_p4 = scmp.lt.s32.totalorder %s588_s7, %s588_s7 }
  0x2a   :  { %491 = vmatprep.mubr.bf16.mxu0 %v536_v4  ;;  %499 = vmatprep.mubr.bf16.mxu1 %v537_v5  ;;  %v539_v11 = vld [vmem:[#allocation2 + $0x28] sm:$0xff]   ;;  %v540_v12 = vld [vmem:[#allocation2 + $0x10] sm:$0xff]   ;;  %v542_v14 = vld [vmem:[#allocation2 + $0x18] sm:$0xff]  }
  0x2b   :  { %v541_v13 = vld [vmem:[#allocation2 + $0x30] sm:$0xff]   ;;  %v543_v15 = vld [vmem:[#allocation2 + $0x38] sm:$0xff]   ;;  %p595_p5 = por %p594_p4, %p593_p3 }
  0x2c   :  { %478 = vmatpush3.bf16.msra.mxu0 %v529_v1  ;;  %516 = vmatpush3.bf16.msra.mxu1 %v529_v1 }
  0x2d   :  { %479 = vmatprep.subr.bf16.mxu0 %v530_v2  ;;  %509 = vmatprep.subr.bf16.mxu1 %v530_v2  ;;  %p596_p6 = pnand %p595_p5, %p589_p2 }
  0x30   :  { %480 = vmatpush3.bf16.msra.mxu0 %v530_v2  ;;  %517 = vmatpush3.bf16.msra.mxu1 %v530_v2 }
  0x31   :  { %481 = vmatprep.subr.bf16.mxu0 %v531_v3  ;;  %510 = vmatprep.subr.bf16.mxu1 %v531_v3 }
  0x34   :  { %482 = vmatpush3.bf16.msra.mxu0 %v531_v3  ;;  %518 = vmatpush3.bf16.msra.mxu1 %v531_v3 }
  0x35   :  { %483 = vmatprep.subr.bf16.mxu0 %v532_v6  ;;  %511 = vmatprep.subr.bf16.mxu1 %v532_v6 }
  0x38   :  { %484 = vmatpush3.bf16.msra.mxu0 %v532_v6  ;;  %519 = vmatpush3.bf16.msra.mxu1 %v532_v6 }
  0x39   :  { %485 = vmatprep.subr.bf16.mxu0 %v533_v7  ;;  %512 = vmatprep.subr.bf16.mxu1 %v533_v7 }
  0x3c   :  { %486 = vmatpush3.bf16.msra.mxu0 %v533_v7  ;;  %520 = vmatpush3.bf16.msra.mxu1 %v533_v7 }
  0x3d   :  { %487 = vmatprep.subr.bf16.mxu0 %v534_v8  ;;  %513 = vmatprep.subr.bf16.mxu1 %v534_v8 }
  0x40   :  { %488 = vmatpush3.bf16.msra.mxu0 %v534_v8  ;;  %521 = vmatpush3.bf16.msra.mxu1 %v534_v8 }
  0x41   :  { %489 = vmatprep.subr.bf16.mxu0 %v535_v9  ;;  %514 = vmatprep.subr.bf16.mxu1 %v535_v9 }
  0x44   :  { %490 = vmatpush3.bf16.msra.mxu0 %v535_v9  ;;  %522 = vmatpush3.bf16.msra.mxu1 %v535_v9 }
  0x47   :  { %492 = vmatmul.mubr.bf16.vlgmr.msra.gmra.mrb[0].mxu0 %v538_v10  ;;  %500 = vmatmul.mubr.bf16.vlgmr.msra.gmra.mrb[0].mxu1 %v539_v11 }
  0x48   :  { %495 = vmatprep.mubr.bf16.mxu0 %v540_v12  ;;  %503 = vmatprep.mubr.bf16.mxu1 %v541_v13 }
  0x4f   :  { %496 = vmatmul.mubr.bf16.gmra.mrb[4].mxu0 %v542_v14  ;;  %504 = vmatmul.mubr.bf16.gmra.mrb[4].mxu1 %v543_v15 }
 0x11a   :  { %v493_v16 = vpop.f32.mrb[0].mxu0  ;;  %v501_v17 = vpop.f32.mrb[0].mxu1 }
 0x11b   :  { %v203_v18 = vpop.f32.mrb[1].mxu0  ;;  %v235_v19 = vpop.f32.mrb[1].mxu1 }
 0x11c   :  { %v494_v20 = vpop.f32.mrb[2].mxu0  ;;  %v502_v21 = vpop.f32.mrb[2].mxu1 }
 0x11d   :  { %v420_v22 = vpack.c.bf16 %v494_v20, %v493_v16  ;;  %v440_v23 = vpack.c.bf16 %v502_v21, %v501_v17  ;;  %v206_v24 = vpop.f32.mrb[3].mxu0  ;;  %v238_v25 = vpop.f32.mrb[3].mxu1 }
 0x11e   :  { %v415_v26 = vpack.c.bf16 %v206_v24, %v203_v18  ;;  %v435_v27 = vpack.c.bf16 %v238_v25, %v235_v19 }
 0x11f   :  { %452 = vst [vmem:[#allocation7 + $0x8] sm:$0xff] %v420_v22   ;;  %456 = vst [vmem:[#allocation7 + $0x28] sm:$0xff] %v440_v23  }
 0x120   :  { %416 = vst [vmem:[#allocation7] sm:$0xff] %v415_v26   ;;  %455 = vst [vmem:[#allocation7 + $0x20] sm:$0xff] %v435_v27  }
 0x122   :  { %v497_v28 = vpop.f32.mrb[4].mxu0  ;;  %v505_v29 = vpop.f32.mrb[4].mxu1 }
 0x123   :  { %v219_v30 = vpop.f32.mrb[5].mxu0  ;;  %v251_v31 = vpop.f32.mrb[5].mxu1 }
 0x124   :  { %v498_v32 = vpop.f32.mrb[6].mxu0  ;;  %v506_v33 = vpop.f32.mrb[6].mxu1 }
 0x125   :  { %v430_v34 = vpack.c.bf16 %v498_v32, %v497_v28  ;;  %v450_v35 = vpack.c.bf16 %v506_v33, %v505_v29  ;;  %v222_v36 = vpop.f32.mrb[7].mxu0  ;;  %v254_v37 = vpop.f32.mrb[7].mxu1 }
 0x126   :  { %v425_v38 = vpack.c.bf16 %v222_v36, %v219_v30  ;;  %v445_v39 = vpack.c.bf16 %v254_v37, %v251_v31 }
 0x127   :  { %454 = vst [vmem:[#allocation7 + $0x18] sm:$0xff] %v430_v34   ;;  %458 = vst [vmem:[#allocation7 + $0x38] sm:$0xff] %v450_v35  }
 0x128   :  { %453 = vst [vmem:[#allocation7 + $0x10] sm:$0xff] %v425_v38   ;;  %457 = vst [vmem:[#allocation7 + $0x30] sm:$0xff] %v445_v39  }
 0x129   :  { %599 = shalt.err (!%p596_p6)
}
 0x12a   :  { %s600_s10 = scalar_lea.hbm %s683_s2, 1024 }
 0x12b   :  { %p601_p7 = scmp.ne.s32.totalorder %s683_s2, %s600_s10  ;;  %p604_p8 = scmp.lt.u32.totalorder %s600_s10, %s683_s2 }
 0x12d   :  { %p606_p9 = pnand %p604_p8, %p601_p7 }
 0x12f   :  { %609 = shalt.err (!%p606_p9)
}
 0x130   :  { %357 = dma.vmem_to_hbm [thread:$0]  %s352_s6, 1024, %s683_s2, [#allocation4], %s617_s19, %s617_s19, %s618_s20  }
 0x131   :  { %614 = dma.done.wait [#allocation4], 1024  }
 0x132   :  { %615 = vsyncadd [#allocation4], 4294966272 }
 0x133   :  { %361 = vsyncpa [#allocation3], 1 }
 0x134   :  { %362 = vsyncpa [#allocation6], 1 }
 0x135   :  { %363 = vsyncpa [#allocation4], 1 }

</bundles_post_ra>
